<compile_context>
chip_gen: v7x
topology: tpu7x:2x2x1
jax: 0.10.0
libtpu: 0.0.40
codegen_flags: <defaults>
</compile_context>

<pallas_src>
import functools

import jax
import jax.numpy as jnp
from jax.experimental import pallas as pl
from jax.experimental.pallas import tpu as pltpu


# ----------------------------- kernel body -----------------------------------

def _rmsnorm_kernel(x_ref, w_ref, o_ref, *, eps, inv_d):
    # x_ref: (tile_rows, hidden), w_ref: (1, hidden).  All math in f32, matching
    # the torch module's .float() promotion.
    xf = x_ref[...].astype(jnp.float32)
    ms = jnp.sum(xf * xf, axis=-1, keepdims=True) * inv_d + eps   # (tile_rows, 1)
    r = jax.lax.rsqrt(ms)                                         # EUP rsqrt (free slot)
    out = w_ref[...].astype(jnp.float32) * (xf * r)
    o_ref[...] = out.astype(o_ref.dtype)


# --------------------------- tiling heuristics --------------------------------

def _round_up(x, m):
    return ((x + m - 1) // m) * m


def _tpu_info():
    try:
        return pltpu.get_tpu_info()
    except Exception:
        return None


def _vmem_capacity_bytes(info):
    cap = getattr(info, "vmem_capacity_bytes", None) if info is not None else None
    if cap:
        return int(cap)
    return 64 * 1024 * 1024  # conservative per-TensorCore value (v7x)


def _num_tensorcores(info):
    if info is None:
        return 2  # conservative: generate enough parallel work for 2 cores
    for attr in ("num_cores", "core_count", "num_tensorcores", "tensorcore_count"):
        v = getattr(info, attr, None)
        if isinstance(v, int) and v > 0:
            return int(v)
    name = str(getattr(info, "chip_version", "") or "")
    if "7" in name:
        return 2
    if any(s in name for s in ("2", "3", "4", "5", "6")):
        return 1
    return 2


def _pick_tile_rows(rows, d, itemsize, sublane):
    """Biggest sublane-aligned row tile whose f32-aware VMEM footprint fits the
    detected chip, shrunk (on multi-TC chips only) so both TensorCores get >= 2
    pipelined blocks each."""
    info = _tpu_info()
    vmem_cap = _vmem_capacity_bytes(info)
    n_cores = _num_tensorcores(info)

    # Per-row VMEM cost: double-buffered native-dtype input + output blocks,
    # plus ~3 f32-wide row temporaries (xf, xf*xf, f32 product) live in the body.
    bytes_per_row = 4 * d * itemsize + 3 * d * 4

    # Generation-aware budget: up to half of VMEM (big blocks on 128 MiB
    # v5e/v6e, safe f32-aware blocks on 64 MiB v7x), capped at 48 MiB.
    budget = min(vmem_cap // 2, 48 * 1024 * 1024)

    tile_rows = max(sublane, (budget // max(1, bytes_per_row)) // sublane * sublane)

    rows_ceil = _round_up(rows, sublane)
    tile_rows = min(tile_rows, rows_ceil)

    if n_cores > 1:
        # Megacore: aim for >= 2 blocks per TensorCore so both cores get work and
        # per-step DMA is overlapped; prefer a step count that is a multiple of
        # the core count so neither core gets an extra giant step.
        min_steps = 2 * n_cores
        if rows_ceil >= min_steps * sublane:
            cap = max(sublane, (rows_ceil // min_steps) // sublane * sublane)
            tile_rows = min(tile_rows, cap)
        steps = -(-rows // tile_rows)
        if steps > 1 and steps % n_cores:
            target = _round_up(steps, n_cores)
            cand = max(sublane, _round_up(-(-rows // target), sublane))
            if (-(-rows // cand)) % n_cores == 0:
                tile_rows = cand

    return tile_rows


# ------------------------------- wrapper --------------------------------------

def rmsnorm_pallas(x, weight, eps=1e-5, *, tile_rows=None):
    """x: (..., in_features), weight: (in_features,). Returns same shape/dtype as x."""
    orig_shape = x.shape
    d = orig_shape[-1]
    x2 = x.reshape(-1, d)
    rows = x2.shape[0]
    itemsize = jnp.dtype(x.dtype).itemsize
    sublane = max(8, 32 // itemsize)            # 8 f32, 16 bf16, 32 int8/fp8

    if tile_rows is None:
        tile_rows = _pick_tile_rows(rows, d, itemsize, sublane)
    else:
        tile_rows = max(sublane, _round_up(int(tile_rows), sublane))
        tile_rows = min(tile_rows, _round_up(rows, sublane))

    # No padding / slicing: partial last block is masked by Pallas (per-row math,
    # so unspecified rows in the partial block are harmless and never written).
    grid = pl.cdiv(rows, tile_rows)

    w2 = weight.reshape(1, d)
    w_itemsize = jnp.dtype(weight.dtype).itemsize

    vmem_cap = _vmem_capacity_bytes(_tpu_info())
    block_bytes = tile_rows * d * itemsize
    needed = (4 * block_bytes                  # double-buffered in + out blocks
              + 2 * d * w_itemsize             # resident weight block
              + 3 * tile_rows * d * 4          # f32 upcast temporaries in the body
              + (4 << 20))                     # headroom
    vmem_limit = int(min(max(needed, 32 << 20), vmem_cap * 0.98))

    cost = pl.CostEstimate(
        flops=3 * rows * d,
        transcendentals=rows,
        bytes_accessed=2 * rows * d * itemsize + d * w_itemsize,
    )

    kernel = functools.partial(_rmsnorm_kernel, eps=float(eps), inv_d=1.0 / float(d))

    out = pl.pallas_call(
        kernel,
        out_shape=jax.ShapeDtypeStruct((rows, d), x.dtype),
        grid_spec=pltpu.PrefetchScalarGridSpec(
            num_scalar_prefetch=0,
            grid=(grid,),
            in_specs=[
                pl.BlockSpec((tile_rows, d), lambda i: (i, 0)),
                pl.BlockSpec((1, d), lambda i: (0, 0)),   # weight stays resident
            ],
            out_specs=pl.BlockSpec((tile_rows, d), lambda i: (i, 0)),
        ),
        compiler_params=pltpu.CompilerParams(
            dimension_semantics=("parallel",),
            vmem_limit_bytes=vmem_limit,
        ),
        cost_estimate=cost,
    )(x2, w2)

    return out.reshape(orig_shape)


def rmsnorm_ref(x, weight, eps=1e-5):
    xf = x.astype(jnp.float32)
    norm_x2 = jnp.sum(xf * xf, axis=-1, keepdims=True)
    rms_x2 = norm_x2 / x.shape[-1] + eps
    r = rms_x2 ** -0.5
    return (weight.astype(jnp.float32) * (xf * r)).astype(x.dtype)


# --------------------------------- main ---------------------------------------

if __name__ == "__main__":
    key = jax.random.PRNGKey(0)

    # Case 1: small f32, shapes implied by the module's forward.
    batch, seq, hidden = 2, 8, 32
    x = jax.random.normal(key, (batch, seq, hidden), dtype=jnp.float32)
    weight = jnp.ones((hidden,), dtype=jnp.float32)   # module __init__ uses ones(in_features)

    out = jax.block_until_ready(rmsnorm_pallas(x, weight, eps=1e-5))
    ref = rmsnorm_ref(x, weight, eps=1e-5)
    assert out.shape == x.shape and out.dtype == x.dtype
    assert jnp.allclose(out, ref, atol=1e-5, rtol=1e-5), "f32 mismatch vs reference"

    # Case 2: bf16, ragged rows (exercises the masked partial-block path, no padding).
    xb = jax.random.normal(jax.random.PRNGKey(0), (13, 128), dtype=jnp.bfloat16)
    wb = jnp.ones((128,), dtype=jnp.bfloat16)
    outb = jax.block_until_ready(rmsnorm_pallas(xb, wb, eps=1e-5))
    refb = rmsnorm_ref(xb, wb, eps=1e-5)
    assert outb.shape == xb.shape and outb.dtype == xb.dtype
    assert jnp.allclose(outb.astype(jnp.float32), refb.astype(jnp.float32),
                        atol=2e-2, rtol=2e-2), "bf16 mismatch vs reference"

    # Case 3: multi-step grid with a partial last block (rows=200 not a multiple of 64).
    xc = jax.random.normal(jax.random.PRNGKey(0), (200, 512), dtype=jnp.float32)
    wc = jnp.ones((512,), dtype=jnp.float32)
    outc = jax.block_until_ready(rmsnorm_pallas(xc, wc, eps=1e-5, tile_rows=64))
    refc = rmsnorm_ref(xc, wc, eps=1e-5)
    assert outc.shape == xc.shape and outc.dtype == xc.dtype
    assert jnp.allclose(outc, refc, atol=1e-5, rtol=1e-5), "multi-step mismatch vs reference"

    print("KERNEL_OK")
</pallas_src>

<mosaic_0001>
module attributes {stable_mosaic.version = 11 : i64} {
  func.func @_rmsnorm_kernel(%arg0: i32, %arg1: memref<16x32xf32, #tpu.memory_space<vmem>>, %arg2: memref<1x32xf32, #tpu.memory_space<vmem>>, %arg3: memref<16x32xf32, #tpu.memory_space<vmem>>) attributes {dimension_semantics = [#tpu.dimension_semantics<parallel>], iteration_bounds = array<i64: 1>, scalar_prefetch = 0 : i64, scratch_operands = 0 : i64, tpu.core_type = #tpu.core_type<tc>, window_params = [{transform_indices = @transform_0, window_bounds = array<i64: 16, 32>}, {pipeline_mode = #tpu.pipeline_mode<synchronous>, transform_indices = @transform_1, window_bounds = array<i64: 1, 32>}, {transform_indices = @transform_2, window_bounds = array<i64: 16, 32>}]} {
    %c0 = arith.constant 0 : index
    %c0_0 = arith.constant 0 : index
    %0 = vector.load %arg1[%c0, %c0_0] : memref<16x32xf32, #tpu.memory_space<vmem>>, vector<16x32xf32>
    %1 = arith.mulf %0, %0 : vector<16x32xf32>
    %cst = arith.constant dense<0.000000e+00> : vector<16xf32>
    %2 = vector.multi_reduction <add>, %1, %cst [1] : vector<16x32xf32> to vector<16xf32>
    %3 = vector.shape_cast %2 : vector<16xf32> to vector<16x1xf32>
    %cst_1 = arith.constant 3.125000e-02 : f32
    %4 = vector.broadcast %cst_1 : f32 to vector<16x1xf32>
    %5 = arith.mulf %3, %4 : vector<16x1xf32>
    %cst_2 = arith.constant 9.99999974E-6 : f32
    %6 = vector.broadcast %cst_2 : f32 to vector<16x1xf32>
    %7 = arith.addf %5, %6 : vector<16x1xf32>
    %8 = math.rsqrt %7 : vector<16x1xf32>
    %c0_3 = arith.constant 0 : index
    %c0_4 = arith.constant 0 : index
    %9 = vector.load %arg2[%c0_3, %c0_4] : memref<1x32xf32, #tpu.memory_space<vmem>>, vector<1x32xf32>
    %10 = vector.broadcast %8 : vector<16x1xf32> to vector<16x32xf32>
    %11 = arith.mulf %0, %10 : vector<16x32xf32>
    %12 = vector.broadcast %9 : vector<1x32xf32> to vector<16x32xf32>
    %13 = arith.mulf %12, %11 : vector<16x32xf32>
    %c0_5 = arith.constant 0 : index
    %c0_6 = arith.constant 0 : index
    %14 = vector.load %arg3[%c0_5, %c0_6] : memref<16x32xf32, #tpu.memory_space<vmem>>, vector<16x32xf32>
    tpu.vector_store %arg3[%c0_5, %c0_6], %13 {strides = array<i32>} : memref<16x32xf32, #tpu.memory_space<vmem>>, vector<16x32xf32>,
    return
  }
  func.func @transform_0(%arg0: i32) -> (i32, i32) {
    %c0_i32 = arith.constant 0 : i32
    %c0_i32_0 = arith.constant 0 : i32
    return %arg0, %c0_i32 : i32, i32
  }
  func.func @transform_1(%arg0: i32) -> (i32, i32) {
    %c0_i32 = arith.constant 0 : i32
    %c0_i32_0 = arith.constant 0 : i32
    %c0_i32_1 = arith.constant 0 : i32
    return %c0_i32, %c0_i32_0 : i32, i32
  }
  func.func @transform_2(%arg0: i32) -> (i32, i32) {
    %c0_i32 = arith.constant 0 : i32
    %c0_i32_0 = arith.constant 0 : i32
    return %arg0, %c0_i32 : i32, i32
  }
}

</mosaic_0001>

<bundles_post_ra>
// kernel: tpu_custom_call.1
= control target key start
LH: loop header
LB: loop body
LE: loop exit
PB: predicated region body
PF: predicated region fallthrough
CT: control target
= control target key end

     0   :  { %7 = vsyncpa [#allocation3], 0  ;;  %s186_s0 = inlined_call_operand.hbm [shape: f32[16,32], index: 0, kind: input, shape index: {}]   ;;  %s187_s1 = inlined_call_operand.vmem [shape: f32[1,32], index: 1, kind: input, shape index: {}]   ;;  %s188_s2 = inlined_call_operand.hbm [shape: f32[16,32], index: 2, kind: output, shape index: {}]  }
   0x1   :  { %8 = vsyncpa [#allocation4], 0  ;;  %s130_s9 = smov [#allocation2]   ;;  %s82_s13 = scalar_lea.hbm %s186_s0, 256 }
   0x2   :  { %s14_s10 = sshll.u32 %s130_s9, 4  ;;  %p83_p0 = scmp.ne.s32.totalorder %s186_s0, %s82_s13  ;;  %s15_s10 = int_to_ptr.vmem [resolvable:$true] %s14_s10 }
   0x3   :  { %p86_p1 = scmp.lt.u32.totalorder %s82_s13, %s186_s0 }
   0x5   :  { %p88_p2 = pnand %p86_p1, %p83_p0 }
   0x7   :  { %91 = shalt.err (!%p88_p2)
}
   0x8   :  { %s92_s18 = scalar_lea.vmem %s15_s10, 256  ;;  %p97_p4 = scmp.lt.s32.totalorder %s15_s10, %s15_s10 }
   0x9   :  { %p93_p3 = scmp.ne.s32.totalorder %s15_s10, %s92_s18  ;;  %p98_p5 = scmp.lt.s32.totalorder %s92_s18, %s92_s18 }
   0xb   :  { %p99_p6 = por %p98_p5, %p97_p4 }
   0xd   :  { %p100_p7 = pnand %p99_p6, %p93_p3 }
   0xf   :  { %103 = shalt.err (!%p100_p7)
}
  0x10   :  { %s131_s19 = smov 128   ;;  %s132_s20 = smov 8  }
  0x11   :  { %20 = dma.hbm_to_vmem [thread:$0]  %s186_s0, 256, %s15_s10, [#allocation3], %s131_s19, %s131_s19, %s132_s20  }
  0x12   :  { %126 = dma.done.wait [#allocation3], 256  }
  0x13   :  { %127 = vsyncadd [#allocation3], 4294967040  ;;  %v26_v0 = vld [vmem:[#allocation2] sm:$0xff]  ;;  %vm30_vm0 = vcmask 261120   ;;  %v27_v1 = vld [vmem:[#allocation2 + $0x8] sm:$0xff]  ;;  %s133_s24 = smov [#allocation5]  }
  0x14   :  { %v28_v2 = vmul.f32 %v26_v0, %v26_v0  ;;  %v29_v3 = vmul.f32 %v27_v1, %v27_v1  ;;  %v73_v13 = vld [vmem:[%s187_s1] ss:$0 sm:$0xff]  ;;  %s61_s25 = sshll.u32 %s133_s24, 4  ;;  %s62_s25 = int_to_ptr.vmem [resolvable:$true] %s61_s25 }
  0x15   :  { %s104_s26 = scalar_lea.vmem %s62_s25, 256  ;;  %p109_p9 = scmp.lt.s32.totalorder %s62_s25, %s62_s25 }
  0x16   :  { %v31_v4 = vsel %vm30_vm0, %v28_v2, 0.0  ;;  %v34_v5 = vsel %vm30_vm0, %v29_v3, 0.0  ;;  %p105_p8 = scmp.ne.s32.totalorder %s62_s25, %s104_s26  ;;  %p110_p10 = scmp.lt.s32.totalorder %s104_s26, %s104_s26 }
  0x17   :  { %32 = vadd.xlane.f32.xlu0 %v31_v4 }
  0x18   :  { %p111_p11 = por %p110_p10, %p109_p9 }
  0x1a   :  { %p112_p12 = pnand %p111_p11, %p105_p8 }
  0x1b   :  { %35 = vadd.xlane.f32.xlu0 %v34_v5 }
  0xa4   :  { %v33_v6 = vpop.xlane.xlu0 %32 }
  0xa5   :  { %v37_v7 = vmul.f32 0.03125, %v33_v6 }
  0xa7   :  { %v39_v8 = vadd.f32 1e-05, %v37_v7 }
  0xa8   :  { %v36_v9 = vpop.xlane.xlu0 %35 }
  0xa9   :  { %78 = vrsqrt.f32 %v39_v8  ;;  %v38_v10 = vmul.f32 0.03125, %v36_v9 }
  0xab   :  { %v40_v11 = vadd.f32 1e-05, %v38_v10 }
  0xad   :  { %80 = vrsqrt.f32 %v40_v11 }
  0xb3   :  { %v79_v12 = vpop.eup %78 }
  0xb4   :  { %v44_v14 = vmul.f32 %v79_v12, %v26_v0 }
  0xb6   :  { %v52_v15 = vmul.f32 %v73_v13, %v44_v14 }
  0xb7   :  { %v81_v16 = vpop.eup %80 }
  0xb8   :  { %v45_v17 = vmul.f32 %v81_v16, %v27_v1  ;;  %54 = vst.msk [vmem:[#allocation5] sm:$0xff] %vm30_vm0, %v52_v15 }
  0xba   :  { %v53_v18 = vmul.f32 %v73_v13, %v45_v17 }
  0xbc   :  { %55 = vst.msk [vmem:[#allocation5 + $0x8] sm:$0xff] %vm30_vm0, %v53_v18 }
  0xbd   :  { %115 = shalt.err (!%p112_p12)
}
  0xbe   :  { %s116_s28 = scalar_lea.hbm %s188_s2, 256 }
  0xbf   :  { %p117_p13 = scmp.ne.s32.totalorder %s188_s2, %s116_s28  ;;  %p120_p0 = scmp.lt.u32.totalorder %s116_s28, %s188_s2 }
  0xc1   :  { %p122_p1 = pnand %p120_p0, %p117_p13 }
  0xc3   :  { %125 = shalt.err (!%p122_p1)
}
  0xc4   :  { %67 = dma.vmem_to_hbm [thread:$0]  %s62_s25, 256, %s188_s2, [#allocation4], %s131_s19, %s131_s19, %s132_s20  }
  0xc5   :  { %128 = dma.done.wait [#allocation4], 256  }
  0xc6   :  { %129 = vsyncadd [#allocation4], 4294967040 }
  0xc7   :  { %71 = vsyncpa [#allocation3], 1 }
  0xc8   :  { %72 = vsyncpa [#allocation4], 1 }

</bundles_post_ra>
